<compile_context>
chip_gen: v5e
topology: v5e:2x2
jax: 0.10.0
libtpu: 0.0.40
codegen_flags: <defaults>
</compile_context>

<pallas_src>
import numpy as np
import jax
import jax.numpy as jnp
from jax.experimental import pallas as pl
from jax.experimental.pallas import tpu as pltpu

MAX_BIAS_NORM = 1.0
MAX_OUTPUT_NORM = 2.0
MINIMUM_NORM = 0.1

# Folded output scales (Re(arctan) carries a 0.5, Im(arctan) carries a 0.25).
_RE_SCALE = MAX_OUTPUT_NORM * 0.5    # == 1.0 -> multiply folded away below
_IM_SCALE = MAX_OUTPUT_NORM * 0.25   # == 0.5


def _rcp(x):
    """Approximate reciprocal on the EUP (separate issue slot from the VPU)."""
    return pl.reciprocal(x, approx=True)


def _atan_nonneg(x):
    """float32 atan(x) for x >= 0, cephes-style range reduction + polynomial.

    Built only from mul/add/rcp/select/compare so it lowers cleanly on the TPU
    VPU/EUP (no reliance on math.atan availability in Mosaic).
    """
    tan3pi8 = 2.414213562373095
    tanpi8 = 0.4142135623730950
    big = x > tan3pi8
    mid = jnp.logical_and(x > tanpi8, jnp.logical_not(big))
    safe_x = jnp.where(x > 0.0, x, 1.0)          # avoid rcp(0) in unselected lanes
    inv_x = _rcp(safe_x)                         # x >= 0 guaranteed
    inv_xp1 = _rcp(x + 1.0)                      # x + 1 >= 1
    xr = jnp.where(big, -inv_x,
                   jnp.where(mid, (x - 1.0) * inv_xp1, x))
    y0 = jnp.where(big, jnp.float32(np.pi / 2),
                   jnp.where(mid, jnp.float32(np.pi / 4), jnp.float32(0.0)))
    z = xr * xr
    p = ((((8.05374449538e-2 * z - 1.38776856032e-1) * z
           + 1.99777106478e-1) * z - 3.33329491539e-1) * z * xr + xr)
    return y0 + p


def _atan2_ynonneg(y, x):
    """atan2(y, x) for y >= 0, via _atan_nonneg + quadrant selection."""
    ax = jnp.abs(x)
    safe_ax = jnp.where(ax > 0.0, ax, 1.0)
    base = _atan_nonneg(y * _rcp(safe_ax))
    return jnp.where(
        x > 0.0, base,
        jnp.where(x < 0.0, jnp.float32(np.pi) - base,
                  jnp.where(y > 0.0, jnp.float32(np.pi / 2), jnp.float32(0.0))))


def multiplicative_bias_kernel(xr_ref, xi_ref, br_ref, bi_ref, or_ref, oi_ref):
    xr = xr_ref[...]
    xi = xi_ref[...]
    # Hoist the (1, H) -> (TB, H) bias broadcast: one broadcast per operand per
    # tile (JAX does not CSE broadcast_in_dim across uses).
    br = jnp.broadcast_to(br_ref[...], xr.shape)
    bi = jnp.broadcast_to(bi_ref[...], xr.shape)

    # Real-valued gate relu(|x| - minimum_norm).
    mag = jnp.sqrt(xr * xr + xi * xi)
    gate = jnp.maximum(mag - MINIMUM_NORM, 0.0)

    # t = gate * x * bias  (complex multiply, gate is real).
    tr = gate * (xr * br - xi * bi)
    ti = gate * (xr * bi + xi * br)

    # TODO(synk): torch.relu is undefined for complex dtype in modern PyTorch;
    # we implement the standard CReLU (relu on real and imag independently).
    ur = jnp.maximum(tr, 0.0)
    ui = jnp.maximum(ti, 0.0)

    # Principal-branch complex arctan(u), u = ur + i*ui (first quadrant):
    #   Re(arctan) = 0.5 * atan2(2*ur, 1 - ur^2 - ui^2)
    #   Im(arctan) = 0.25 * ( log((1+ui)^2 + ur^2) - log((1-ui)^2 + ur^2) )
    # Output scales folded: MAX_OUTPUT_NORM * 0.5 == 1.0, * 0.25 == 0.5.
    re = _atan2_ynonneg(2.0 * ur, 1.0 - ur * ur - ui * ui)
    if _RE_SCALE != 1.0:          # static Python-time fold
        re = _RE_SCALE * re
    log_num = jnp.log((1.0 + ui) * (1.0 + ui) + ur * ur)
    log_den = jnp.log((1.0 - ui) * (1.0 - ui) + ur * ur)
    im = _IM_SCALE * (log_num - log_den)

    or_ref[...] = re
    oi_ref[...] = im


def multiplicative_bias(xr, xi, bias_r, bias_i, *, block_rows=1024):
    """Forward pass. x given as (B, H) float32 real/imag planes, bias as (H,)."""
    B, H = xr.shape
    br2 = bias_r.reshape(1, H)
    bi2 = bias_i.reshape(1, H)

    # Pick the batch-tile size: 4 streamed f32 planes (xr, xi, out_r, out_i),
    # each double-buffered by the auto-pipeline.  Keep the working set under a
    # conservative 8 MiB so it fits every chip's scoped-VMEM default
    # (v5e 16 MiB / v6e 32 MiB / v7x 32 MiB) without raising vmem_limit_bytes.
    bytes_per_row = 4 * 2 * H * 4
    vmem_budget = 8 * 1024 * 1024
    cap = max(8, (vmem_budget // bytes_per_row) // 8 * 8)
    tb = min(block_rows, cap)
    if B <= tb:
        tb = B                       # full-extent block is always legal
    else:
        tb = max(8, (tb // 8) * 8)   # f32 sublane alignment when tiling

    grid = (pl.cdiv(B, tb),)
    xo_spec = pl.BlockSpec((tb, H), lambda i: (i, 0))
    # Bias block index is constant across the grid -> stays resident in VMEM
    # (no re-DMA per step).
    b_spec = pl.BlockSpec((1, H), lambda i: (0, 0))

    out_r, out_i = pl.pallas_call(
        multiplicative_bias_kernel,
        out_shape=(jax.ShapeDtypeStruct((B, H), jnp.float32),
                   jax.ShapeDtypeStruct((B, H), jnp.float32)),
        grid=grid,
        in_specs=[xo_spec, xo_spec, b_spec, b_spec],
        out_specs=(xo_spec, xo_spec),
        compiler_params=pltpu.CompilerParams(
            # Embarrassingly parallel over batch tiles -> let v7x shard the
            # grid across both TensorCores (no-op on v5e/v6e).
            dimension_semantics=("parallel",)),
    )(xr, xi, br2, bi2)
    return out_r, out_i


if __name__ == "__main__":
    B, H = 32, 128
    key = jax.random.PRNGKey(0)
    k1, k2, k3, k4 = jax.random.split(key, 4)

    # x: complex input, stored as real/imag float32 planes.
    xr = jax.random.normal(k1, (B, H), dtype=jnp.float32)
    xi = jax.random.normal(k2, (B, H), dtype=jnp.float32)
    # bias = max_bias_norm * rand(hidden, cfloat): real & imag ~ U[0, 1).
    bias_r = MAX_BIAS_NORM * jax.random.uniform(k3, (H,), dtype=jnp.float32)
    bias_i = MAX_BIAS_NORM * jax.random.uniform(k4, (H,), dtype=jnp.float32)

    # Use a small block_rows so the test exercises the multi-tile grid path
    # (B=32, tb=8 -> 4 grid steps with the bias block resident).
    out_r, out_i = multiplicative_bias(xr, xi, bias_r, bias_i, block_rows=8)
    jax.block_until_ready((out_r, out_i))

    # Pure-numpy reference of the forward pass (complex arithmetic).
    x = np.asarray(xr).astype(np.complex64) + 1j * np.asarray(xi).astype(np.complex64)
    b = np.asarray(bias_r).astype(np.complex64) + 1j * np.asarray(bias_i).astype(np.complex64)
    gate = np.maximum(np.abs(x) - MINIMUM_NORM, 0.0)
    t = gate * x * b[None, :]
    u = np.maximum(t.real, 0.0) + 1j * np.maximum(t.imag, 0.0)   # CReLU
    ref = MAX_OUTPUT_NORM * np.arctan(u)

    got = np.asarray(out_r) + 1j * np.asarray(out_i)
    # 2e-3: headroom for the approx-reciprocal range reduction (~2^-12 rel err);
    # still tight enough to catch any formula / branch / broadcast bug.
    np.testing.assert_allclose(got, ref, rtol=2e-3, atol=2e-3)
    print("KERNEL_OK")
</pallas_src>

<mosaic_0001>
module attributes {stable_mosaic.version = 11 : i64} {
  func.func @multiplicative_bias_kernel(%arg0: i32, %arg1: memref<8x128xf32, #tpu.memory_space<vmem>>, %arg2: memref<8x128xf32, #tpu.memory_space<vmem>>, %arg3: memref<1x128xf32, #tpu.memory_space<vmem>>, %arg4: memref<1x128xf32, #tpu.memory_space<vmem>>, %arg5: memref<8x128xf32, #tpu.memory_space<vmem>>, %arg6: memref<8x128xf32, #tpu.memory_space<vmem>>) attributes {dimension_semantics = [#tpu.dimension_semantics<parallel>], iteration_bounds = array<i64: 4>, scalar_prefetch = 0 : i64, scratch_operands = 0 : i64, tpu.core_type = #tpu.core_type<tc>, window_params = [{transform_indices = @transform_0, window_bounds = array<i64: 8, 128>}, {transform_indices = @transform_1, window_bounds = array<i64: 8, 128>}, {pipeline_mode = #tpu.pipeline_mode<synchronous>, transform_indices = @transform_2, window_bounds = array<i64: 1, 128>}, {pipeline_mode = #tpu.pipeline_mode<synchronous>, transform_indices = @transform_3, window_bounds = array<i64: 1, 128>}, {transform_indices = @transform_4, window_bounds = array<i64: 8, 128>}, {transform_indices = @transform_5, window_bounds = array<i64: 8, 128>}]} {
    %c0 = arith.constant 0 : index
    %c0_0 = arith.constant 0 : index
    %0 = vector.load %arg1[%c0, %c0_0] : memref<8x128xf32, #tpu.memory_space<vmem>>, vector<8x128xf32>
    %c0_1 = arith.constant 0 : index
    %c0_2 = arith.constant 0 : index
    %1 = vector.load %arg2[%c0_1, %c0_2] : memref<8x128xf32, #tpu.memory_space<vmem>>, vector<8x128xf32>
    %c0_3 = arith.constant 0 : index
    %c0_4 = arith.constant 0 : index
    %2 = vector.load %arg3[%c0_3, %c0_4] : memref<1x128xf32, #tpu.memory_space<vmem>>, vector<1x128xf32>
    %3 = vector.shape_cast %2 : vector<1x128xf32> to vector<1x128xf32>
    %4 = vector.broadcast %3 : vector<1x128xf32> to vector<8x128xf32>
    %c0_5 = arith.constant 0 : index
    %c0_6 = arith.constant 0 : index
    %5 = vector.load %arg4[%c0_5, %c0_6] : memref<1x128xf32, #tpu.memory_space<vmem>>, vector<1x128xf32>
    %6 = vector.shape_cast %5 : vector<1x128xf32> to vector<1x128xf32>
    %7 = vector.broadcast %6 : vector<1x128xf32> to vector<8x128xf32>
    %8 = arith.mulf %0, %0 : vector<8x128xf32>
    %9 = arith.mulf %1, %1 : vector<8x128xf32>
    %10 = arith.addf %8, %9 : vector<8x128xf32>
    %11 = math.sqrt %10 : vector<8x128xf32>
    %cst = arith.constant 1.000000e-01 : f32
    %12 = vector.broadcast %cst : f32 to vector<8x128xf32>
    %13 = arith.subf %11, %12 : vector<8x128xf32>
    %cst_7 = arith.constant 0.000000e+00 : f32
    %14 = vector.broadcast %cst_7 : f32 to vector<8x128xf32>
    %15 = arith.maximumf %13, %14 : vector<8x128xf32>
    %16 = arith.mulf %0, %4 : vector<8x128xf32>
    %17 = arith.mulf %1, %7 : vector<8x128xf32>
    %18 = arith.subf %16, %17 : vector<8x128xf32>
    %19 = arith.mulf %15, %18 : vector<8x128xf32>
    %20 = arith.mulf %0, %7 : vector<8x128xf32>
    %21 = arith.mulf %1, %4 : vector<8x128xf32>
    %22 = arith.addf %20, %21 : vector<8x128xf32>
    %23 = arith.mulf %15, %22 : vector<8x128xf32>
    %cst_8 = arith.constant 0.000000e+00 : f32
    %24 = vector.broadcast %cst_8 : f32 to vector<8x128xf32>
    %25 = arith.maximumf %19, %24 : vector<8x128xf32>
    %cst_9 = arith.constant 0.000000e+00 : f32
    %26 = vector.broadcast %cst_9 : f32 to vector<8x128xf32>
    %27 = arith.maximumf %23, %26 : vector<8x128xf32>
    %cst_10 = arith.constant 2.000000e+00 : f32
    %28 = vector.broadcast %cst_10 : f32 to vector<8x128xf32>
    %29 = arith.mulf %28, %25 : vector<8x128xf32>
    %30 = arith.mulf %25, %25 : vector<8x128xf32>
    %cst_11 = arith.constant 1.000000e+00 : f32
    %31 = vector.broadcast %cst_11 : f32 to vector<8x128xf32>
    %32 = arith.subf %31, %30 : vector<8x128xf32>
    %33 = arith.mulf %27, %27 : vector<8x128xf32>
    %34 = arith.subf %32, %33 : vector<8x128xf32>
    %35 = math.absf %34 : vector<8x128xf32>
    %cst_12 = arith.constant 0.000000e+00 : f32
    %36 = vector.broadcast %cst_12 : f32 to vector<8x128xf32>
    %37 = arith.cmpf ogt, %35, %36 : vector<8x128xf32>
    %cst_13 = arith.constant 1.000000e+00 : f32
    %38 = vector.broadcast %cst_13 : f32 to vector<8x128xf32>
    %39 = arith.select %37, %35, %38 : vector<8x128xi1>, vector<8x128xf32>
    %40 = tpu.reciprocal %39 {approx = true} : vector<8x128xf32> -> vector<8x128xf32>
    %41 = arith.mulf %29, %40 : vector<8x128xf32>
    %cst_14 = arith.constant 2.41421366 : f32
    %42 = vector.broadcast %cst_14 : f32 to vector<8x128xf32>
    %43 = arith.cmpf ogt, %41, %42 : vector<8x128xf32>
    %cst_15 = arith.constant 0.414213568 : f32
    %44 = vector.broadcast %cst_15 : f32 to vector<8x128xf32>
    %45 = arith.cmpf ogt, %41, %44 : vector<8x128xf32>
    %cst_16 = arith.constant dense<true> : vector<8x128xi1>
    %46 = arith.xori %43, %cst_16 : vector<8x128xi1>
    %47 = arith.andi %45, %46 : vector<8x128xi1>
    %cst_17 = arith.constant 0.000000e+00 : f32
    %48 = vector.broadcast %cst_17 : f32 to vector<8x128xf32>
    %49 = arith.cmpf ogt, %41, %48 : vector<8x128xf32>
    %cst_18 = arith.constant 1.000000e+00 : f32
    %50 = vector.broadcast %cst_18 : f32 to vector<8x128xf32>
    %51 = arith.select %49, %41, %50 : vector<8x128xi1>, vector<8x128xf32>
    %52 = tpu.reciprocal %51 {approx = true} : vector<8x128xf32> -> vector<8x128xf32>
    %cst_19 = arith.constant 1.000000e+00 : f32
    %53 = vector.broadcast %cst_19 : f32 to vector<8x128xf32>
    %54 = arith.addf %41, %53 : vector<8x128xf32>
    %55 = tpu.reciprocal %54 {approx = true} : vector<8x128xf32> -> vector<8x128xf32>
    %cst_20 = arith.constant 0.000000e+00 : f32
    %56 = vector.broadcast %cst_20 : f32 to vector<8x128xf32>
    %57 = arith.subf %56, %52 : vector<8x128xf32>
    %cst_21 = arith.constant 1.000000e+00 : f32
    %58 = vector.broadcast %cst_21 : f32 to vector<8x128xf32>
    %59 = arith.subf %41, %58 : vector<8x128xf32>
    %60 = arith.mulf %59, %55 : vector<8x128xf32>
    %61 = arith.select %47, %60, %41 : vector<8x128xi1>, vector<8x128xf32>
    %62 = arith.select %43, %57, %61 : vector<8x128xi1>, vector<8x128xf32>
    %cst_22 = arith.constant 0.785398185 : f32
    %cst_23 = arith.constant 0.000000e+00 : f32
    %63 = vector.broadcast %cst_22 : f32 to vector<8x128xf32>
    %64 = vector.broadcast %cst_23 : f32 to vector<8x128xf32>
    %65 = arith.select %47, %63, %64 : vector<8x128xi1>, vector<8x128xf32>
    %cst_24 = arith.constant 1.57079637 : f32
    %66 = vector.broadcast %cst_24 : f32 to vector<8x128xf32>
    %67 = arith.select %43, %66, %65 : vector<8x128xi1>, vector<8x128xf32>
    %68 = arith.mulf %62, %62 : vector<8x128xf32>
    %cst_25 = arith.constant 0.0805374458 : f32
    %69 = vector.broadcast %cst_25 : f32 to vector<8x128xf32>
    %70 = arith.mulf %69, %68 : vector<8x128xf32>
    %cst_26 = arith.constant 0.138776854 : f32
    %71 = vector.broadcast %cst_26 : f32 to vector<8x128xf32>
    %72 = arith.subf %70, %71 : vector<8x128xf32>
    %73 = arith.mulf %72, %68 : vector<8x128xf32>
    %cst_27 = arith.constant 0.199777111 : f32
    %74 = vector.broadcast %cst_27 : f32 to vector<8x128xf32>
    %75 = arith.addf %73, %74 : vector<8x128xf32>
    %76 = arith.mulf %75, %68 : vector<8x128xf32>
    %cst_28 = arith.constant 0.333329499 : f32
    %77 = vector.broadcast %cst_28 : f32 to vector<8x128xf32>
    %78 = arith.subf %76, %77 : vector<8x128xf32>
    %79 = arith.mulf %78, %68 : vector<8x128xf32>
    %80 = arith.mulf %79, %62 : vector<8x128xf32>
    %81 = arith.addf %80, %62 : vector<8x128xf32>
    %82 = arith.addf %67, %81 : vector<8x128xf32>
    %cst_29 = arith.constant 0.000000e+00 : f32
    %83 = vector.broadcast %cst_29 : f32 to vector<8x128xf32>
    %84 = arith.cmpf ogt, %34, %83 : vector<8x128xf32>
    %cst_30 = arith.constant 0.000000e+00 : f32
    %85 = vector.broadcast %cst_30 : f32 to vector<8x128xf32>
    %86 = arith.cmpf olt, %34, %85 : vector<8x128xf32>
    %cst_31 = arith.constant 3.14159274 : f32
    %87 = vector.broadcast %cst_31 : f32 to vector<8x128xf32>
    %88 = arith.subf %87, %82 : vector<8x128xf32>
    %cst_32 = arith.constant 0.000000e+00 : f32
    %89 = vector.broadcast %cst_32 : f32 to vector<8x128xf32>
    %90 = arith.cmpf ogt, %29, %89 : vector<8x128xf32>
    %cst_33 = arith.constant 1.57079637 : f32
    %cst_34 = arith.constant 0.000000e+00 : f32
    %91 = vector.broadcast %cst_33 : f32 to vector<8x128xf32>
    %92 = vector.broadcast %cst_34 : f32 to vector<8x128xf32>
    %93 = arith.select %90, %91, %92 : vector<8x128xi1>, vector<8x128xf32>
    %94 = arith.select %86, %88, %93 : vector<8x128xi1>, vector<8x128xf32>
    %95 = arith.select %84, %82, %94 : vector<8x128xi1>, vector<8x128xf32>
    %cst_35 = arith.constant 1.000000e+00 : f32
    %96 = vector.broadcast %cst_35 : f32 to vector<8x128xf32>
    %97 = arith.addf %96, %27 : vector<8x128xf32>
    %cst_36 = arith.constant 1.000000e+00 : f32
    %98 = vector.broadcast %cst_36 : f32 to vector<8x128xf32>
    %99 = arith.addf %98, %27 : vector<8x128xf32>
    %100 = arith.mulf %97, %99 : vector<8x128xf32>
    %101 = arith.mulf %25, %25 : vector<8x128xf32>
    %102 = arith.addf %100, %101 : vector<8x128xf32>
    %103 = math.log %102 : vector<8x128xf32>
    %cst_37 = arith.constant 1.000000e+00 : f32
    %104 = vector.broadcast %cst_37 : f32 to vector<8x128xf32>
    %105 = arith.subf %104, %27 : vector<8x128xf32>
    %cst_38 = arith.constant 1.000000e+00 : f32
    %106 = vector.broadcast %cst_38 : f32 to vector<8x128xf32>
    %107 = arith.subf %106, %27 : vector<8x128xf32>
    %108 = arith.mulf %105, %107 : vector<8x128xf32>
    %109 = arith.mulf %25, %25 : vector<8x128xf32>
    %110 = arith.addf %108, %109 : vector<8x128xf32>
    %111 = math.log %110 : vector<8x128xf32>
    %112 = arith.subf %103, %111 : vector<8x128xf32>
    %cst_39 = arith.constant 5.000000e-01 : f32
    %113 = vector.broadcast %cst_39 : f32 to vector<8x128xf32>
    %114 = arith.mulf %113, %112 : vector<8x128xf32>
    %c0_40 = arith.constant 0 : index
    %c0_41 = arith.constant 0 : index
    %115 = vector.load %arg5[%c0_40, %c0_41] : memref<8x128xf32, #tpu.memory_space<vmem>>, vector<8x128xf32>
    tpu.vector_store %arg5[%c0_40, %c0_41], %95 {strides = array<i32>} : memref<8x128xf32, #tpu.memory_space<vmem>>, vector<8x128xf32>,
    %c0_42 = arith.constant 0 : index
    %c0_43 = arith.constant 0 : index
    %116 = vector.load %arg6[%c0_42, %c0_43] : memref<8x128xf32, #tpu.memory_space<vmem>>, vector<8x128xf32>
    tpu.vector_store %arg6[%c0_42, %c0_43], %114 {strides = array<i32>} : memref<8x128xf32, #tpu.memory_space<vmem>>, vector<8x128xf32>,
    return
  }
  func.func @transform_0(%arg0: i32) -> (i32, i32) {
    %c0_i32 = arith.constant 0 : i32
    %c0_i32_0 = arith.constant 0 : i32
    return %arg0, %c0_i32 : i32, i32
  }
  func.func @transform_1(%arg0: i32) -> (i32, i32) {
    %c0_i32 = arith.constant 0 : i32
    %c0_i32_0 = arith.constant 0 : i32
    return %arg0, %c0_i32 : i32, i32
  }
  func.func @transform_2(%arg0: i32) -> (i32, i32) {
    %c0_i32 = arith.constant 0 : i32
    %c0_i32_0 = arith.constant 0 : i32
    %c0_i32_1 = arith.constant 0 : i32
    return %c0_i32, %c0_i32_0 : i32, i32
  }
  func.func @transform_3(%arg0: i32) -> (i32, i32) {
    %c0_i32 = arith.constant 0 : i32
    %c0_i32_0 = arith.constant 0 : i32
    %c0_i32_1 = arith.constant 0 : i32
    return %c0_i32, %c0_i32_0 : i32, i32
  }
  func.func @transform_4(%arg0: i32) -> (i32, i32) {
    %c0_i32 = arith.constant 0 : i32
    %c0_i32_0 = arith.constant 0 : i32
    return %arg0, %c0_i32 : i32, i32
  }
  func.func @transform_5(%arg0: i32) -> (i32, i32) {
    %c0_i32 = arith.constant 0 : i32
    %c0_i32_0 = arith.constant 0 : i32
    return %arg0, %c0_i32 : i32, i32
  }
}

</mosaic_0001>

<bundles_post_ra>
// kernel: tpu_custom_call.1
= control target key start
LH: loop header
LB: loop body
LE: loop exit
PB: predicated region body
PF: predicated region fallthrough
CT: control target
= control target key end

     0   :  { %s1049_s0 = inlined_call_operand.hbm [shape: f32[32,128], index: 0, kind: input, shape index: {}]   ;;  %s1050_s1 = inlined_call_operand.hbm [shape: f32[32,128], index: 1, kind: input, shape index: {}]   ;;  %s1051_s2 = inlined_call_operand.vmem [shape: f32[1,128], index: 2, kind: input, shape index: {}]   ;;  %s1052_s3 = inlined_call_operand.vmem [shape: f32[1,128], index: 3, kind: input, shape index: {}]   ;;  %s1053_s4 = inlined_call_operand.hbm [shape: f32[32,128], index: 4, kind: output, shape index: {0}]   ;;  %s1054_s5 = inlined_call_operand.hbm [shape: f32[32,128], index: 5, kind: output, shape index: {1}]  }
   0x1   :  { %1055 = sst [smem:[#allocation15_spill]] %s1049_s0 }
   0x2   :  { %11 = vsyncpa [#allocation3], 0 }
   0x3   :  { %13 = vsyncpa [#allocation3 + $0x1], 0 }
   0x4   :  { %14 = vsyncpa [#allocation6], 0 }
   0x5   :  { %16 = vsyncpa [#allocation6 + $0x1], 0 }
   0x6   :  { %17 = vsyncpa [#allocation4], 0 }
   0x7   :  { %19 = vsyncpa [#allocation4 + $0x1], 0 }
   0x8   :  { %20 = vsyncpa [#allocation9], 0 }
   0x9   :  { %22 = vsyncpa [#allocation9 + $0x1], 0  ;;  %s838_s18 = smov 0   ;;  %s840_s19 = smov 0  }
   0xa   :  { %s842_s20 = smov 0   ;;  %s844_s21 = smov 0  }
   0xb LB: > { %s859_s22 = sadd.s32 4294967295, %s804_s21   ;;  %s548_s23 = sadd.s32 4294967294, %s804_s21   ;;  %s804_s21 = sphi %s844_s21, %s1070_s21   ;;  %s800_s20 = sphi %s842_s20, %s1069_s20   ;;  %s796_s19 = sphi %s840_s19, %s1068_s19   ;;  %s792_s18 = sphi %s838_s18, %s1067_s18  }
   0xc   : > { %s863_s24 = sadd.s32 1, %s804_s21   ;;  %s35_s25 = sadd.s32 1, %s800_s20 }
   0xd   : > { %s32_s26 = ssub.s32 %s804_s21, %s863_s24  ;;  %p42_p0 = scmp.ne.s32.totalorder %s800_s20, %s796_s19 }
   0xe   : > { %p33_p1 = scmp.eq.s32.totalorder %s32_s26, 0  ;;  %p43_p2 = scmp.eq.s32.totalorder %s804_s21, 0 }
   0xf   : > { %p48_p3 = scmp.ne.s32.totalorder %s796_s19, %s792_s18  ;;  %p49_p4 = scmp.eq.s32.totalorder %s859_s22, 0 }
  0x10   : > { %s875_s27 = scalar_select %p33_p1, %s800_s20, %s35_s25  }
  0x11   : > { %p877_p5 = por %p43_p2, %p42_p0  ;;  %p881_p6 = por %p49_p4, %p48_p3 }
  0x12   : > { %1056 = sst [smem:[#allocation14_spill]] %s875_s27  ;;  %p140_p7 = scmp.eq.s32.totalorder %s859_s22, 3 }
  0x13   : > { %p146_p8 = scmp.eq.s32.totalorder %s548_s23, 3  ;;  %p592_p9 = scmp.lt.s32.totalorder %s804_s21, 4 }
  0x14   : > { %p887_p10 = por %p140_p7, %p42_p0  ;;  %s896_s7 = sand.u32 1, %s800_s20  }
  0x15   : > { %p891_p11 = por %p146_p8, %p48_p3  ;;  %s552_s8 = sshll.u32 %s804_s21, 3 }
  0x16   : > { %s551_s9 = sshll.u32 %s896_s7, 3  ;;  %s1061_s0 = sld [smem:[#allocation15_spill]] }
  0x17   : > { %s202_s14 = scalar_lea.vmem [#allocation2], %s551_s9  ;;  %p905_p12 = pnand %p592_p9, %p877_p5 }
  0x18   : > { %s210_s15 = sshll.u32 %s202_s14, 4  ;;  %p555_p13 = scmp.ge.s32.totalorder %s804_s21, 1  ;;  %s211_s15 = int_to_ptr.vmem [resolvable:$true] %s210_s15 }
  0x19   : > { %p234_p0 = scmp.lt.s32.totalorder %s804_s21, 5  ;;  %s199_s17 = scalar_lea.sflag [#allocation3], %s896_s7 }
  0x1a   : > { %p646_p2 = pneg %p905_p12 }
  0x1c   : > { %s206_s12 = scalar_lea.hbm %s1061_s0, %s552_s8  ;;  %s649_s10 = scalar_lea.hbm %s1061_s0, 32 }
  0x1d   : > { %s208_s13 = sshll.u32 %s206_s12, 4  ;;  %s209_s13 = int_to_ptr.hbm [resolvable:$true] %s208_s13 }
  0x1e   : > { %s642_s23 = sshra.s32 %s209_s13, 4  ;;  %s643_s23 = int_to_ptr.hbm [resolvable:$true] %s642_s23 }
  0x1f   : > { %s644_s25 = scalar_lea.hbm %s643_s23, 8  ;;  %p650_p5 = scmp.lt.s32.totalorder %s643_s23, %s1061_s0 }
  0x20   : > { %p645_p1 = scmp.ne.s32.totalorder %s643_s23, %s644_s25  ;;  %p651_p7 = scmp.lt.s32.totalorder %s649_s10, %s644_s25 }
  0x22   : > { %p647_p3 = pnand %p646_p2, %p645_p1  ;;  %p652_p8 = por %p651_p7, %p650_p5 }
  0x24   : > { %p648_p4 = pneg %p647_p3 }
  0x26   : > { %p653_p9 = pnand %p652_p8, %p648_p4 }
  0x28   : > { %656 = shalt.err (!%p653_p9)
}
  0x29   : > { %581 = dma.hbm_to_vmem [thread:$0]  (!%p905_p12), %s209_s13, 128, %s211_s15, %s199_s17  }
  0x2a   : > { %p929_p1 = pnand %p555_p13, %p234_p0  ;;  %s225_s23 = scalar_lea.hbm %s1050_s1, %s552_s8 }
  0x2b   : > { %s227_s25 = sshll.u32 %s225_s23, 4  ;;  %s221_s10 = scalar_lea.vmem [#allocation5], %s551_s9  ;;  %s228_s25 = int_to_ptr.hbm [resolvable:$true] %s227_s25 }
  0x2c   : > { %s229_s11 = sshll.u32 %s221_s10, 4  ;;  %s218_s12 = scalar_lea.sflag [#allocation6], %s896_s7  ;;  %s230_s11 = int_to_ptr.vmem [resolvable:$true] %s229_s11 }
  0x2d   : > { %s672_s0 = sshra.s32 %s228_s25, 4  ;;  %s679_s17 = scalar_lea.hbm %s1050_s1, 32  ;;  %s673_s0 = int_to_ptr.hbm [resolvable:$true] %s672_s0 }
  0x2e   : > { %s674_s27 = scalar_lea.hbm %s673_s0, 8  ;;  %p680_p4 = scmp.lt.s32.totalorder %s673_s0, %s1050_s1 }
  0x2f   : > { %p675_p3 = scmp.ne.s32.totalorder %s673_s0, %s674_s27  ;;  %p681_p5 = scmp.lt.s32.totalorder %s679_s17, %s674_s27 }
  0x31   : > { %p677_p13 = pnand %p675_p3, %p646_p2  ;;  %p682_p7 = por %p681_p5, %p680_p4 }
  0x33   : > { %p678_p0 = pneg %p677_p13 }
  0x35   : > { %p683_p8 = pnand %p682_p7, %p678_p0 }
  0x37   : > { %686 = shalt.err (!%p683_p8)
}
  0x38   : > { %584 = dma.hbm_to_vmem [thread:$0]  (!%p905_p12), %s228_s25, 128, %s230_s11, %s218_s12  }
  0x39   : > { %238 = sbr.rel (%p929_p1) target bundleno = 161 (0xa1), region = 36  ;;  %s951_s7 = sand.u32 (!%p929_p1), 1, %s796_s19  }
  0x3a   : > { %s954_s9 = sshll.u32 (!%p929_p1), %s951_s7, 3  ;;  %s241_s0 = scalar_lea.sflag (!%p929_p1), [#allocation3], %s951_s7 }
  0x3b   : > { %s244_s27 = scalar_lea.vmem (!%p929_p1), [#allocation2], %s954_s9 }
  0x3e   : > { %775 = dma.done.wait (%p881_p6), %s241_s0, 128  }
  0x3f   : > { %777 = vsyncadd (%p881_p6), %s241_s0, 4294967168  ;;  %s251_s16 = scalar_lea.sflag [#allocation6], %s951_s7  ;;  %s254_s14 = scalar_lea.vmem [#allocation5], %s954_s9 }
  0x40   : > { %779 = dma.done.wait (%p881_p6), %s251_s16, 128  }
  0x41   : > { %781 = vsyncadd (%p881_p6), %s251_s16, 4294967168  ;;  %v292_v0 = vld [vmem:[%s244_s27] sm:$0xff]  ;;  %v293_v1 = vld [vmem:[%s254_s14] sm:$0xff]  ;;  %s566_s29 = sshll.u32 %s859_s22, 3  ;;  %s291_s15 = scalar_lea.vmem [#allocation8], %s954_s9  ;;  %vm806_vm6 = vmmov 1  }
  0x42   : > { %v302_v2 = vmul.f32 %v292_v0, %v292_v0  ;;  %v303_v3 = vmul.f32 %v293_v1, %v293_v1  ;;  %v628_v9 = vld [vmem:[%s1051_s2] ss:$0 sm:$0xff]  ;;  %s417_s13 = scalar_lea.hbm %s1054_s5, %s566_s29  ;;  %s987_s17 = sshll.u32 %s291_s15, 4  ;;  %s420_s17 = int_to_ptr.vmem [resolvable:$true] %s987_s17 }
  0x43   : > { %v629_v10 = vld [vmem:[%s1052_s3] ss:$0 sm:$0xff]  ;;  %v319_v14 = vmul.f32 %v628_v9, %v292_v0  ;;  %v324_v18 = vmul.f32 %v628_v9, %v293_v1  ;;  %s421_s26 = sshll.u32 %s417_s13, 4  ;;  %s393_s8 = scalar_lea.sflag [#allocation9], %s951_s7  ;;  %s422_s26 = int_to_ptr.hbm [resolvable:$true] %s421_s26 }
  0x44   : > { %v304_v4 = vadd.f32 %v303_v3, %v302_v2  ;;  %v320_v15 = vmul.f32 %v629_v10, %v293_v1  ;;  %v323_v17 = vmul.f32 %v629_v10, %v292_v0  ;;  %s716_s0 = sshra.s32 %s422_s26, 4  ;;  %s722_s28 = scalar_lea.hbm %s1054_s5, 32  ;;  %s717_s0 = int_to_ptr.hbm [resolvable:$true] %s716_s0 }
  0x45   : > { %s718_s27 = scalar_lea.hbm %s717_s0, 8  ;;  %p723_p9 = scmp.lt.s32.totalorder %s717_s0, %s1054_s5 }
  0x46   : > { %630 = vrsqrt.f32 %v304_v4  ;;  %vm312_vm0 = vcmp.eq.f32.partialorder %v304_v4, inf  ;;  %v315_v13 = vand.u32 2147483648, %v304_v4  ;;  %vm314_vm1 = vcmp.eq.f32.partialorder %v304_v4, 0.0  ;;  %p719_p6 = scmp.ne.s32.totalorder %s717_s0, %s718_s27  ;;  %p724_p1 = scmp.lt.s32.totalorder %s722_s28, %s718_s27 }
  0x47   : > { %v321_v22 = vsub.f32 %v319_v14, %v320_v15  ;;  %v325_v23 = vadd.f32 %v324_v18, %v323_v17 }
  0x48   : > { %p720_p12 = pnand %p719_p6, %p887_p10  ;;  %p725_p3 = por %p724_p1, %p723_p9 }
  0x4a   : > { %p721_p2 = pneg %p720_p12 }
  0x4c   : > { %v631_v5 = vpop.eup %630  ;;  %p726_p13 = pnand %p725_p3, %p721_p2 }
  0x4d   : > { %v306_v6 = vmul.f32 %v631_v5, %v304_v4 }
  0x4f   : > { %v307_v7 = vmul.f32 %v631_v5, %v306_v6 }
  0x51   : > { %v308_v8 = vmul.f32 0.5, %v307_v7 }
  0x53   : > { %v309_v11 = vsub.f32 1.5, %v308_v8 }
  0x55   : > { %v310_v12 = vmul.f32 %v631_v5, %v309_v11 }
  0x57   : > { %v311_v16 = vmul.f32 %v310_v12, %v304_v4 }
  0x59   : > { %v313_v19 = vsel %vm312_vm0, %v304_v4, %v311_v16 }
  0x5a   : > { %v316_v20 = vsel %vm314_vm1, %v315_v13, %v313_v19 }
  0x5b   : > { %v560_v21 = vadd.f32 -0.1, %v316_v20 }
  0x5d   : > { %v318_v24 = vmax.f32 %v560_v21, 0.0 }
  0x5f   : > { %v322_v25 = vmul.f32 %v321_v22, %v318_v24  ;;  %v326_v26 = vmul.f32 %v325_v23, %v318_v24 }
  0x61   : > { %v327_v27 = vmax.f32 %v322_v25, 0.0  ;;  %v328_v28 = vmax.f32 %v326_v26, 0.0 }
  0x63   : > { %v330_v29 = vmul.f32 %v327_v27, %v327_v27  ;;  %v332_v30 = vmul.f32 %v328_v28, %v328_v28  ;;  %v373_v34 = vadd.f32 1.0, %v328_v28  ;;  %v378_v35 = vsub.f32 1.0, %v328_v28 }
  0x64   : > { %v977_v41 = vmul.f32 2.0, %v327_v27 }
  0x65   : > { %v331_v31 = vsub.f32 1.0, %v330_v29  ;;  %v374_v37 = vmul.f32 %v373_v34, %v373_v34  ;;  %v379_v38 = vmul.f32 %v378_v35, %v378_v35 }
  0x67   : > { %v974_v32 = vsub.f32 %v331_v31, %v332_v30  ;;  %v375_v39 = vadd.f32 %v374_v37, %v330_v29  ;;  %v380_v40 = vadd.f32 %v379_v38, %v330_v29 }
  0x69   : > { %v334_v33 = vand.u32 2147483647, %v974_v32 }
  0x6b   : > { %vm335_vm2 = vcmp.gt.f32.partialorder %v334_v33, 0.0 }
  0x6c   : > { %v336_v36 = vsel %vm335_vm2, %v334_v33, 1.0 }
  0x6d   : > { %632 = vrcp.f32 %v336_v36 }
  0x6e   : > { %634 = vlog2.f32 %v375_v39 }
  0x6f   : > { %636 = vlog2.f32 %v380_v40 }
  0x73   : > { %v633_v42 = vpop.eup %632 }
  0x74   : > { %v338_v43 = vmul.f32 %v633_v42, %v977_v41  ;;  %v635_v45 = vpop.eup %634 }
  0x75   : > { %v637_v47 = vpop.eup %636  ;;  %v377_v48 = vmul.f32 0.6931472, %v635_v45 }
  0x76   : > { %vm343_vm3 = vcmp.gt.f32.partialorder %v338_v43, 0.0  ;;  %v346_v44 = vadd.f32 1.0, %v338_v43  ;;  %vm339_vm4 = vcmp.gt.f32.partialorder %v338_v43, 2.4142137  ;;  %v382_v49 = vmul.f32 0.6931472, %v637_v47 }
  0x77   : > { %v344_v46 = vsel %vm343_vm3, %v338_v43, 1.0  ;;  %vm340_vm5 = vcmp.gt.f32.partialorder %v338_v43, 0.41421357  ;;  %vm341_vm7 = vmxor %vm339_vm4, %vm806_vm6  ;;  %v561_v51 = vadd.f32 -1.0, %v338_v43 }
  0x78   : > { %638 = vrcp.f32 %v344_v46  ;;  %v383_v50 = vsub.f32 %v377_v48, %v382_v49  ;;  %vm991_vm8 = vmand %vm340_vm5, %vm341_vm7 }
  0x79   : > { %640 = vrcp.f32 %v346_v44 }
  0x7a   : > { %v384_v52 = vmul.f32 0.5, %v383_v50 }
  0x7c   : > { %386 = vst [vmem:[%s291_s15] sm:$0xff] %v384_v52 }
  0x7e   : > { %v639_v53 = vpop.eup %638 }
  0x7f   : > { %v641_v54 = vpop.eup %640  ;;  %v348_v56 = vsub.f32 0.0, %v639_v53 }
  0x80   : > { %v350_v57 = vmul.f32 %v641_v54, %v561_v51 }
  0x81   : > { %729 = shalt.err (!%p726_p13)
}
  0x82   : > { %575 = dma.vmem_to_hbm [thread:$0]  (%p887_p10), %s420_s17, 128, %s422_s26, %s393_s8   ;;  %v351_v58 = vsel %vm991_vm8, %v350_v57, %v338_v43  ;;  %v807_v3 = vmov 0.0   ;;  %vm369_vm9 = vcmp.gt.f32.partialorder %v977_v41, 0.0  ;;  %vm367_vm10 = vcmp.lt.f32.partialorder %v974_v32, 0.0 }
  0x83   : > { %v352_v59 = vsel %vm339_vm4, %v348_v56, %v351_v58  ;;  %v353_v4 = vsel %vm991_vm8, 0.7853982, %v807_v3  ;;  %s403_s12 = scalar_lea.hbm %s1053_s4, %s566_s29  ;;  %s284_s13 = scalar_lea.vmem [#allocation7], %s954_s9  ;;  %v370_v10 = vsel %vm369_vm9, 1.5707964, %v807_v3  ;;  %vm366_vm11 = vcmp.gt.f32.partialorder %v974_v32, 0.0 }
  0x84   : > { %v355_v60 = vmul.f32 %v352_v59, %v352_v59  ;;  %v354_v7 = vsel %vm339_vm4, 1.5707964, %v353_v4  ;;  %s405_s15 = sshll.u32 %s284_s13, 4  ;;  %s407_s17 = sshll.u32 %s403_s12, 4  ;;  %s406_s15 = int_to_ptr.vmem [resolvable:$true] %s405_s15  ;;  %s408_s17 = int_to_ptr.hbm [resolvable:$true] %s407_s17 }
  0x85   : > { %s388_s22 = scalar_lea.sflag [#allocation4], %s951_s7  ;;  %s744_s26 = sshra.s32 %s408_s17, 4  ;;  %s745_s26 = int_to_ptr.hbm [resolvable:$true] %s744_s26 }
  0x86   : > { %v356_v61 = vmul.f32 0.080537446, %v355_v60  ;;  %s746_s29 = scalar_lea.hbm %s745_s26, 8  ;;  %s750_s0 = scalar_lea.hbm %s1053_s4, 32 }
  0x87   : > { %p747_p0 = scmp.ne.s32.totalorder %s745_s26, %s746_s29  ;;  %p751_p7 = scmp.lt.s32.totalorder %s745_s26, %s1053_s4 }
  0x88   : > { %v562_v62 = vadd.f32 -0.13877685, %v356_v61  ;;  %p752_p8 = scmp.lt.s32.totalorder %s750_s0, %s746_s29 }
  0x89   : > { %p748_p4 = pnand %p747_p0, %p887_p10 }
  0x8a   : > { %v358_v63 = vmul.f32 %v562_v62, %v355_v60  ;;  %p753_p6 = por %p752_p8, %p751_p7 }
  0x8b   : > { %p749_p5 = pneg %p748_p4 }
  0x8c   : > { %v359_v0 = vadd.f32 0.19977711, %v358_v63 }
  0x8d   : > { %p754_p12 = pnand %p753_p6, %p749_p5 }
  0x8e   : > { %v360_v1 = vmul.f32 %v359_v0, %v355_v60 }
  0x90   : > { %v563_v2 = vadd.f32 -0.3333295, %v360_v1 }
  0x92   : > { %v362_v5 = vmul.f32 %v563_v2, %v355_v60 }
  0x94   : > { %v363_v6 = vmul.f32 %v362_v5, %v352_v59 }
  0x96   : > { %v364_v8 = vadd.f32 %v363_v6, %v352_v59 }
  0x98   : > { %v365_v9 = vadd.f32 %v364_v8, %v354_v7 }
  0x9a   : > { %v368_v11 = vsub.f32 3.1415927, %v365_v9 }
  0x9c   : > { %v371_v12 = vsel %vm367_vm10, %v368_v11, %v370_v10 }
  0x9d   : > { %v372_v13 = vsel %vm366_vm11, %v365_v9, %v371_v12 }
  0x9e   : > { %385 = vst [vmem:[%s284_s13] sm:$0xff] %v372_v13 }
  0x9f   : > { %757 = shalt.err (!%p754_p12)
}
  0xa0   : > { %574 = dma.vmem_to_hbm [thread:$0]  (%p887_p10), %s406_s15, 128, %s408_s17, %s388_s22  }
  0xa1 PF: > { %p593_p2 = scmp.ge.s32.totalorder %s804_s21, 2  ;;  %s433_s7 = sand.u32 1, %s792_s18  }
  0xa2   : > { %s434_s14 = scalar_lea.sflag [#allocation4], %s433_s7 }
  0xa3   : > { %p586_p9 = pnand %p593_p2, %p891_p11 }
  0xa5   : > { %p587_p1 = pneg %p586_p9 }
  0xa7   : > { %783 = dma.done.wait (%p587_p1), %s434_s14, 128  }
  0xa8   : > { %785 = vsyncadd (%p587_p1), %s434_s14, 4294967168  ;;  %s444_s28 = scalar_lea.sflag [#allocation9], %s433_s7 }
  0xa9   : > { %787 = dma.done.wait (%p587_p1), %s444_s28, 128  }
  0xaa   : > { %789 = vsyncadd (%p587_p1), %s444_s28, 4294967168  ;;  %s1066_s30 = sld [smem:[#allocation14_spill]]  ;;  %p25_p10 = scmp.ge.s32.totalorder %s863_s24, 6  }
  0xab   : > { %s1067_s18 = smov %s796_s19  ;;  %s1068_s19 = smov %s800_s20 }
  0xac   : > { %s1070_s21 = smov %s863_s24  ;;  %27 = sbr.rel (!%p25_p10) target bundleno = 11 (0xb), region = 111 }
  0xb0   : > { %s1069_s20 = smov %s1066_s30 }
  0xb1   :  { %450 = vsyncpa [#allocation3], 1 }
  0xb2   :  { %452 = vsyncpa [#allocation3 + $0x1], 1 }
  0xb3   :  { %453 = vsyncpa [#allocation6], 1 }
  0xb4   :  { %455 = vsyncpa [#allocation6 + $0x1], 1 }
  0xb5   :  { %456 = vsyncpa [#allocation4], 1 }
  0xb6   :  { %458 = vsyncpa [#allocation4 + $0x1], 1 }
  0xb7   :  { %459 = vsyncpa [#allocation9], 1 }
  0xb8   :  { %461 = vsyncpa [#allocation9 + $0x1], 1 }

</bundles_post_ra>
